<compile_context>
chip_gen: v7x
topology: tpu7x:2x2x1
jax: 0.10.0
libtpu: 0.0.40
codegen_flags: <defaults>
</compile_context>

<pallas_src>
import functools

import jax
import jax.numpy as jnp
from jax.experimental import pallas as pl
from jax.experimental.pallas import tpu as pltpu

_HALO = 128       # lane width of the halo view; must cover dilation*(K-1)
_MAX_TILE = 512   # output-length tile (lanes); sized well below v7x 64 MiB VMEM


def _round_up(x, m):
    return (x + m - 1) // m * m


def _conv_tile(xm_ref, xh_ref, w2_ref, *, K, dilation, stride, TL):
    """LeakyReLU + depthwise dilated conv + pointwise conv for one (n, L-tile).

    xm_ref : (1, C_in_p, TL*stride)   main input window (padded layout)
    xh_ref : (1, C_in_p, _HALO)       next 128 input columns (dilation halo)
    w2_ref : (C_out_p, K*C_in_p)      combined depthwise*pointwise weight
    returns: (C_out_p, TL) float32    pre-BatchNorm activations for this tile
    """
    span = TL * stride
    x = jnp.concatenate([xm_ref[0], xh_ref[0]], axis=-1).astype(jnp.float32)
    y = jnp.where(x > 0, x, jnp.float32(0.3) * x)          # LeakyReLU(0.3)
    # im2col over the channel axis: stack the K dilated taps -> (K*C_in_p, span).
    taps = [y[:, k * dilation:k * dilation + span] for k in range(K)]
    a = jnp.concatenate(taps, axis=0) if K > 1 else taps[0]
    pw = jnp.dot(w2_ref[...], a, preferred_element_type=jnp.float32)
    if stride > 1:
        pw = pw[:, ::stride]     # one decimation instead of K strided gathers
    return pw


def _stats_kernel(xm_ref, xh_ref, w2_ref, stats_ref, *, K, dilation, stride,
                  TL, L_out):
    j = pl.program_id(1)
    pw = _conv_tile(xm_ref, xh_ref, w2_ref, K=K, dilation=dilation,
                    stride=stride, TL=TL)
    lane = jax.lax.broadcasted_iota(jnp.int32, pw.shape, 1)
    valid = (j * TL + lane) < L_out     # mask the ragged tail of the last tile
    pwm = jnp.where(valid, pw, jnp.float32(0.0))
    s1 = jnp.sum(pwm, axis=1, keepdims=True)            # (C_out_p, 1)
    s2 = jnp.sum(pwm * pwm, axis=1, keepdims=True)      # (C_out_p, 1)
    stats_ref[0, 0] = jnp.concatenate([s1, s2], axis=1)


def _apply_kernel(xm_ref, xh_ref, w2_ref, a_ref, b_ref, out_ref, *, K,
                  dilation, stride, TL):
    pw = _conv_tile(xm_ref, xh_ref, w2_ref, K=K, dilation=dilation,
                    stride=stride, TL=TL)
    out_ref[0] = (pw * a_ref[...] + b_ref[...]).astype(out_ref.dtype)


def dil_conv(x, w_dw, w_pw, gamma, beta, *, kernel_size, stride, padding,
             dilation, eps=1e-5):
    """x: (N, C_in, L); w_dw: (C_in, 1, K); w_pw: (C_out, C_in, 1);
    gamma/beta: (C_out,). Returns (N, C_out, L_out) float32 (train-mode BN)."""
    N, C_in, L = x.shape
    C_out = w_pw.shape[0]
    K = kernel_size
    L_out = (L + 2 * padding - dilation * (K - 1) - 1) // stride + 1
    assert L_out > 0
    assert dilation * (K - 1) <= _HALO, "halo view too narrow for dilation*(K-1)"

    C_in_p = _round_up(C_in, 8)
    C_out_p = _round_up(C_out, 8)
    TL = min(_MAX_TILE, _round_up(L_out, 128))     # lane-dense output tile
    n_tiles = pl.cdiv(L_out, TL)
    TLS = TL * stride                              # input cols per main block
    L_pad = n_tiles * TLS + _HALO                  # padded input length

    # One small pad: conv zero-padding + tile/halo alignment + channel padding.
    # TODO(synk): the conv zero-padding could be folded into the kernel with lane
    # masking to avoid this extra HBM copy of x.
    x_pad = jnp.pad(
        x.astype(jnp.float32),
        ((0, 0), (0, C_in_p - C_in), (padding, L_pad - L - padding)))

    # Combined weight: W2[o, k*C_in_p + c] = w_pw[o, c] * w_dw[c, k].
    wdw_t = w_dw[:, 0, :].astype(jnp.float32).T          # (K, C_in)
    wpw = w_pw[:, :, 0].astype(jnp.float32)              # (C_out, C_in)
    comb = wpw[:, None, :] * wdw_t[None, :, :]           # (C_out, K, C_in)
    comb = jnp.pad(comb, ((0, C_out_p - C_out), (0, 0), (0, C_in_p - C_in)))
    w2 = comb.reshape(C_out_p, K * C_in_p)

    gamma_p = jnp.pad(gamma.astype(jnp.float32), (0, C_out_p - C_out))
    beta_p = jnp.pad(beta.astype(jnp.float32), (0, C_out_p - C_out))

    halo_blk = TLS // _HALO
    xm_spec = pl.BlockSpec((1, C_in_p, TLS), lambda n, j: (n, 0, j))
    xh_spec = pl.BlockSpec((1, C_in_p, _HALO),
                           lambda n, j: (n, 0, (j + 1) * halo_blk))
    w2_spec = pl.BlockSpec((C_out_p, K * C_in_p), lambda n, j: (0, 0))
    cparams = pltpu.CompilerParams(
        dimension_semantics=("parallel", "parallel"))

    # ---- pass 1: per-tile partial sums / sums-of-squares of pre-BN activations ----
    stats = pl.pallas_call(
        functools.partial(_stats_kernel, K=K, dilation=dilation, stride=stride,
                          TL=TL, L_out=L_out),
        grid=(N, n_tiles),
        in_specs=[xm_spec, xh_spec, w2_spec],
        out_specs=pl.BlockSpec((1, 1, C_out_p, 2), lambda n, j: (n, j, 0, 0)),
        out_shape=jax.ShapeDtypeStruct((N, n_tiles, C_out_p, 2), jnp.float32),
        compiler_params=cparams,
    )(x_pad, x_pad, w2)

    # Tiny global reduction + BN affine folding: out = pw * a + b.
    tot = jnp.sum(stats, axis=(0, 1))                      # (C_out_p, 2)
    count = jnp.float32(N * L_out)
    mean = tot[:, 0] / count
    var = jnp.maximum(tot[:, 1] / count - mean * mean, 0.0)
    a = gamma_p * jax.lax.rsqrt(var + jnp.float32(eps))
    b = beta_p - mean * a

    # ---- pass 2: recompute conv tile, apply folded BN, lane-dense output ----
    out_p = pl.pallas_call(
        functools.partial(_apply_kernel, K=K, dilation=dilation, stride=stride,
                          TL=TL),
        grid=(N, n_tiles),
        in_specs=[xm_spec, xh_spec, w2_spec,
                  pl.BlockSpec((C_out_p, 1), lambda n, j: (0, 0)),
                  pl.BlockSpec((C_out_p, 1), lambda n, j: (0, 0))],
        out_specs=pl.BlockSpec((1, C_out_p, TL), lambda n, j: (n, 0, j)),
        out_shape=jax.ShapeDtypeStruct((N, C_out_p, n_tiles * TL), jnp.float32),
        compiler_params=cparams,
    )(x_pad, x_pad, w2, a[:, None], b[:, None])

    return out_p[:, :C_out, :L_out]


def _reference(x, w_dw, w_pw, gamma, beta, *, stride, padding, dilation,
               eps=1e-5):
    """Pure-JAX reference mirroring the PyTorch module (train-mode BN)."""
    y = jnp.where(x > 0, x, 0.3 * x)
    dw = jax.lax.conv_general_dilated(
        y, w_dw, window_strides=(stride,), padding=[(padding, padding)],
        rhs_dilation=(dilation,), dimension_numbers=('NCH', 'OIH', 'NCH'),
        feature_group_count=x.shape[1])
    pw = jax.lax.conv_general_dilated(
        dw, w_pw, window_strides=(1,), padding=[(0, 0)],
        dimension_numbers=('NCH', 'OIH', 'NCH'))
    mean = jnp.mean(pw, axis=(0, 2), keepdims=True)
    var = jnp.mean((pw - mean) ** 2, axis=(0, 2), keepdims=True)
    return ((pw - mean) * jax.lax.rsqrt(var + eps)
            * gamma[None, :, None] + beta[None, :, None])


def _run_case(key, N, C_in, C_out, L, kernel_size, stride, padding, dilation):
    kx, kdw, kpw, kg, kb = jax.random.split(key, 5)
    x = jax.random.normal(kx, (N, C_in, L), dtype=jnp.float32)
    w_dw = jax.random.normal(kdw, (C_in, 1, kernel_size), jnp.float32) * 0.5
    w_pw = jax.random.normal(kpw, (C_out, C_in, 1), jnp.float32) * 0.5
    gamma = 1.0 + 0.1 * jax.random.normal(kg, (C_out,), jnp.float32)
    beta = 0.1 * jax.random.normal(kb, (C_out,), jnp.float32)

    out = dil_conv(x, w_dw, w_pw, gamma, beta, kernel_size=kernel_size,
                   stride=stride, padding=padding, dilation=dilation)
    out = jax.block_until_ready(out)

    ref = _reference(x, w_dw, w_pw, gamma, beta, stride=stride,
                     padding=padding, dilation=dilation)
    assert out.shape == ref.shape, (out.shape, ref.shape)
    err = float(jnp.max(jnp.abs(out - ref)))
    assert jnp.allclose(out, ref, rtol=1e-3, atol=1e-3), err


if __name__ == "__main__":
    key = jax.random.PRNGKey(0)
    k1, k2 = jax.random.split(key)
    # Small spec-like shape: single L tile, channel padding 4 -> 8.
    _run_case(k1, N=2, C_in=4, C_out=8, L=16,
              kernel_size=3, stride=1, padding=2, dilation=2)
    # Exercises multi-tile grid, cross-tile halo, ragged-tail BN masking.
    _run_case(k2, N=2, C_in=6, C_out=10, L=700,
              kernel_size=3, stride=1, padding=2, dilation=2)
    # TODO(synk): BatchNorm running_mean/running_var buffer updates (stateful
    # training-time side effect of the PyTorch module) are not modeled.
    print("KERNEL_OK")
</pallas_src>

<mosaic_0001>
module attributes {stable_mosaic.version = 11 : i64} {
  func.func @_stats_kernel(%arg0: i32, %arg1: i32, %arg2: memref<1x8x128xf32, #tpu.memory_space<vmem>>, %arg3: memref<1x8x128xf32, #tpu.memory_space<vmem>>, %arg4: memref<8x24xf32, #tpu.memory_space<vmem>>, %arg5: memref<1x1x8x2xf32, #tpu.memory_space<vmem>>) attributes {dimension_semantics = [#tpu.dimension_semantics<parallel>, #tpu.dimension_semantics<parallel>], iteration_bounds = array<i64: 2, 1>, scalar_prefetch = 0 : i64, scratch_operands = 0 : i64, tpu.core_type = #tpu.core_type<tc>, window_params = [{transform_indices = @transform_0, window_bounds = array<i64: 1, 8, 128>}, {transform_indices = @transform_1, window_bounds = array<i64: 1, 8, 128>}, {pipeline_mode = #tpu.pipeline_mode<synchronous>, transform_indices = @transform_2, window_bounds = array<i64: 8, 24>}, {transform_indices = @transform_3, window_bounds = array<i64: 1, 1, 8, 2>}]} {
    %c0 = arith.constant 0 : index
    %c0_0 = arith.constant 0 : index
    %c0_1 = arith.constant 0 : index
    %0 = vector.load %arg2[%c0, %c0_0, %c0_1] : memref<1x8x128xf32, #tpu.memory_space<vmem>>, vector<1x8x128xf32>
    %1 = vector.shape_cast %0 : vector<1x8x128xf32> to vector<8x128xf32>
    %c0_2 = arith.constant 0 : index
    %c0_3 = arith.constant 0 : index
    %c0_4 = arith.constant 0 : index
    %2 = vector.load %arg3[%c0_2, %c0_3, %c0_4] : memref<1x8x128xf32, #tpu.memory_space<vmem>>, vector<1x8x128xf32>
    %3 = vector.shape_cast %2 : vector<1x8x128xf32> to vector<8x128xf32>
    %4 = tpu.concatenate %1, %3 in 1 : vector<8x128xf32>, vector<8x128xf32> -> vector<8x256xf32>
    %cst = arith.constant 0.000000e+00 : f32
    %5 = vector.broadcast %cst : f32 to vector<8x256xf32>
    %6 = arith.cmpf ogt, %4, %5 : vector<8x256xf32>
    %cst_5 = arith.constant 3.000000e-01 : f32
    %7 = vector.broadcast %cst_5 : f32 to vector<8x256xf32>
    %8 = arith.mulf %7, %4 : vector<8x256xf32>
    %9 = arith.select %6, %4, %8 : vector<8x256xi1>, vector<8x256xf32>
    %10 = vector.extract_strided_slice %9 {offsets = [0, 0], sizes = [8, 128], strides = [1, 1]} : vector<8x256xf32> to vector<8x128xf32>
    %11 = vector.extract_strided_slice %9 {offsets = [0, 2], sizes = [8, 128], strides = [1, 1]} : vector<8x256xf32> to vector<8x128xf32>
    %12 = vector.extract_strided_slice %9 {offsets = [0, 4], sizes = [8, 128], strides = [1, 1]} : vector<8x256xf32> to vector<8x128xf32>
    %13 = tpu.concatenate %10, %11, %12 in 0 : vector<8x128xf32>, vector<8x128xf32>, vector<8x128xf32> -> vector<24x128xf32>
    %c0_6 = arith.constant 0 : index
    %c0_7 = arith.constant 0 : index
    %14 = vector.load %arg4[%c0_6, %c0_7] : memref<8x24xf32, #tpu.memory_space<vmem>>, vector<8x24xf32>
    %cst_8 = arith.constant dense<0.000000e+00> : vector<8x128xf32>
    %15 = tpu.matmul %14, %13, %cst_8 {dimension_numbers = #tpu.dot_dimension_numbers<[1], [0], [0], [1], [0, 0, 1, 1], [], []>} : vector<8x24xf32>, vector<24x128xf32>, vector<8x128xf32> -> vector<8x128xf32>
    %16 = tpu.iota {dimensions = array<i32: 1>} : vector<8x128xi32>
    %c128_i32 = arith.constant 128 : i32
    %17 = arith.muli %arg1, %c128_i32 : i32
    %18 = vector.broadcast %17 : i32 to vector<8x128xi32>
    %19 = arith.addi %18, %16 : vector<8x128xi32>
    %c16_i32 = arith.constant 16 : i32
    %20 = vector.broadcast %c16_i32 : i32 to vector<8x128xi32>
    %21 = arith.cmpi slt, %19, %20 : vector<8x128xi32>
    %cst_9 = arith.constant 0.000000e+00 : f32
    %22 = vector.broadcast %cst_9 : f32 to vector<8x128xf32>
    %23 = arith.select %21, %15, %22 : vector<8x128xi1>, vector<8x128xf32>
    %cst_10 = arith.constant dense<0.000000e+00> : vector<8xf32>
    %24 = vector.multi_reduction <add>, %23, %cst_10 [1] : vector<8x128xf32> to vector<8xf32>
    %25 = vector.shape_cast %24 : vector<8xf32> to vector<8x1xf32>
    %26 = arith.mulf %23, %23 : vector<8x128xf32>
    %cst_11 = arith.constant dense<0.000000e+00> : vector<8xf32>
    %27 = vector.multi_reduction <add>, %26, %cst_11 [1] : vector<8x128xf32> to vector<8xf32>
    %28 = vector.shape_cast %27 : vector<8xf32> to vector<8x1xf32>
    %29 = tpu.concatenate %25, %28 in 1 : vector<8x1xf32>, vector<8x1xf32> -> vector<8x2xf32>
    %c0_12 = arith.constant 0 : index
    %c0_13 = arith.constant 0 : index
    %c0_14 = arith.constant 0 : index
    %c0_15 = arith.constant 0 : index
    %30 = vector.load %arg5[%c0_12, %c0_13, %c0_14, %c0_15] : memref<1x1x8x2xf32, #tpu.memory_space<vmem>>, vector<1x1x8x2xf32>
    %31 = vector.shape_cast %30 : vector<1x1x8x2xf32> to vector<8x2xf32>
    %32 = vector.shape_cast %29 : vector<8x2xf32> to vector<1x1x8x2xf32>
    tpu.vector_store %arg5[%c0_12, %c0_13, %c0_14, %c0_15], %32 {strides = array<i32>} : memref<1x1x8x2xf32, #tpu.memory_space<vmem>>, vector<1x1x8x2xf32>,
    return
  }
  func.func @transform_0(%arg0: i32, %arg1: i32) -> (i32, i32, i32) {
    %c0_i32 = arith.constant 0 : i32
    %c0_i32_0 = arith.constant 0 : i32
    return %arg0, %c0_i32, %arg1 : i32, i32, i32
  }
  func.func @transform_1(%arg0: i32, %arg1: i32) -> (i32, i32, i32) {
    %c1_i32 = arith.constant 1 : i32
    %0 = arith.addi %arg1, %c1_i32 : i32
    %c1_i32_0 = arith.constant 1 : i32
    %1 = arith.muli %0, %c1_i32_0 : i32
    %c0_i32 = arith.constant 0 : i32
    %c0_i32_1 = arith.constant 0 : i32
    return %arg0, %c0_i32, %1 : i32, i32, i32
  }
  func.func @transform_2(%arg0: i32, %arg1: i32) -> (i32, i32) {
    %c0_i32 = arith.constant 0 : i32
    %c0_i32_0 = arith.constant 0 : i32
    %c0_i32_1 = arith.constant 0 : i32
    return %c0_i32, %c0_i32_0 : i32, i32
  }
  func.func @transform_3(%arg0: i32, %arg1: i32) -> (i32, i32, i32, i32) {
    %c0_i32 = arith.constant 0 : i32
    %c0_i32_0 = arith.constant 0 : i32
    %c0_i32_1 = arith.constant 0 : i32
    return %arg0, %arg1, %c0_i32, %c0_i32_0 : i32, i32, i32, i32
  }
}

</mosaic_0001>

<bundles_post_ra>
// kernel: tpu_custom_call.1
= control target key start
LH: loop header
LB: loop body
LE: loop exit
PB: predicated region body
PF: predicated region fallthrough
CT: control target
= control target key end

     0   :  { %8 = vsyncpa [#allocation3], 0  ;;  %s1000_s0 = inlined_call_operand.hbm [shape: f32[2,8,256], index: 0, kind: input, shape index: {}]   ;;  %s1001_s1 = inlined_call_operand.hbm [shape: f32[2,8,256], index: 1, kind: input, shape index: {}]   ;;  %s1002_s2 = inlined_call_operand.hbm [shape: f32[8,24], index: 2, kind: input, shape index: {}]   ;;  %s1003_s3 = inlined_call_operand.vmem [shape: f32[2,1,8,2], index: 3, kind: output, shape index: {}]  }
   0x1   :  { %10 = vsyncpa [#allocation3 + $0x1], 0 }
   0x2   :  { %11 = vsyncpa [#allocation5], 0 }
   0x3   :  { %13 = vsyncpa [#allocation5 + $0x1], 0  ;;  %s797_s12 = smov 0   ;;  %s799_s13 = smov 0  }
   0x4   :  { %s801_s14 = smov 0   ;;  %s803_s15 = smov 0  }
   0x5   :  { %s805_s16 = smov 0   ;;  %s807_s17 = smov 0  }
   0x6 LB: > { %s502_s18 = sadd.s32 4294967295, %s767_s17   ;;  %p53_p0 = scmp.ne.s32.totalorder %s751_s13, %s747_s12  ;;  %s767_s17 = sphi %s807_s17, %s19_s17   ;;  %s763_s16 = sphi %s805_s16, %s1022_s16   ;;  %s759_s15 = sphi %s803_s15, %s1021_s15   ;;  %s755_s14 = sphi %s801_s14, %s1020_s14   ;;  %s751_s13 = sphi %s799_s13, %s1019_s13   ;;  %s747_s12 = sphi %s797_s12, %s1018_s12  }
   0x7   : > { %p829_p1 = scmp.eq.s32.totalorder %s502_s18, 0  ;;  %p504_p2 = scmp.ge.s32.totalorder %s767_s17, 1 }
   0x8   : > { %p143_p3 = scmp.lt.s32.totalorder %s767_s17, 3  ;;  %s769_s22 = smov [#allocation6]  }
   0x9   : > { %s1008_s19 = scalar_select %p829_p1, 1, 0 }
   0xa   : > { %p837_p4 = por %p829_p1, %p53_p0  ;;  %p841_p5 = pnand %p504_p2, %p143_p3 }
   0xb   : > { %s156_s23 = sshll.u32 %s769_s22, 4  ;;  %s31_s25 = sadd.s32 1, %s763_s16  ;;  %s157_s23 = int_to_ptr.vmem [resolvable:$true] %s156_s23 }
   0xc   : > { %s1009_s20 = scalar_select %p837_p4, 1, 0 }
   0xd   : > { %s1010_s21 = scalar_select %p841_p5, 1, 0 }
   0xe   : > { %p547_p6 = pneg %p841_p5  ;;  %s40_s26 = sadd.s32 1, %s755_s14 }
   0xf   : > { %p855_p8 = scmp.ge.s32.totalorder %s31_s25, 2  ;;  %s620_s30 = scalar_lea.hbm %s1002_s2, 128 }
  0x10   : > { %p849_p7 = pnand %p547_p6, %p829_p1  ;;  %p621_p9 = scmp.ne.s32.totalorder %s1002_s2, %s620_s30 }
  0x11   : > { %s1012_s27 = scalar_select %p855_p8, 1, 0 }
  0x12   : > { %p622_p10 = pneg %p849_p7  ;;  %p627_p13 = scmp.lt.u32.totalorder %s620_s30, %s1002_s2 }
  0x14   : > { %p623_p11 = pnand %p622_p10, %p621_p9 }
  0x16   : > { %p624_p12 = pneg %p623_p11 }
  0x18   : > { %p629_p0 = pnand %p627_p13, %p624_p12 }
  0x1a   : > { %632 = shalt.err (!%p629_p0)
}
  0x1b   : > { %s633_s8 = scalar_lea.vmem %s157_s23, 128  ;;  %p641_p1 = scmp.lt.s32.totalorder %s157_s23, %s157_s23 }
  0x1c   : > { %p634_p2 = scmp.ne.s32.totalorder %s157_s23, %s633_s8  ;;  %p642_p4 = scmp.lt.s32.totalorder %s633_s8, %s633_s8 }
  0x1e   : > { %p636_p3 = pnand %p634_p2, %p622_p10  ;;  %p643_p5 = por %p642_p4, %p641_p1 }
  0x20   : > { %p637_p6 = pneg %p636_p3 }
  0x22   : > { %p644_p8 = pnand %p643_p5, %p637_p6 }
  0x24   : > { %647 = shalt.err (!%p644_p8)
}
  0x25   : > { %550 = dma.hbm_to_vmem [thread:$0]  (!%p849_p7), %s1002_s2, 128, %s157_s23, [#allocation5]  }
  0x26   : > { %p1013_p9 = scmp.ne.s32.totalorder %s1012_s27, 0  ;;  %p47_p1 = scmp.ne.s32.totalorder %s755_s14, %s751_s13 }
  0x27   : > { %p48_p4 = scmp.eq.s32.totalorder %s767_s17, 0  ;;  %p559_p5 = scmp.lt.s32.totalorder %s767_s17, 2 }
  0x28   : > { %s1024_s25 = smov (%p1013_p9, %s31_s25), 0  ;;  %s167_s12 = sand.u32 1, %s755_s14  }
  0x29   : > { %s35_s11 = ssub.s32 %s763_s16, %s1024_s25  ;;  %p49_p10 = por %p48_p4, %p47_p1 }
  0x2a   : > { %p38_p8 = scmp.eq.s32.totalorder %s35_s11, 0  ;;  %s521_s22 = sshll.u32 %s763_s16, 8 }
  0x2b   : > { %s892_s28 = sshll.u32 %s167_s12, 3  ;;  %s897_s23 = scalar_lea.hbm %s1000_s0, %s521_s22 }
  0x2c   : > { %s890_s24 = scalar_select %p38_p8, %s755_s14, %s40_s26  }
  0x2d   : > { %s171_s27 = scalar_lea.vmem [#allocation2], %s892_s28  ;;  %p900_p7 = pnand %p559_p5, %p49_p10 }
  0x2e   : > { %s180_s4 = sshll.u32 %s171_s27, 4  ;;  %s909_s7 = scalar_lea.hbm %s1001_s1, %s521_s22  ;;  %s904_s4 = int_to_ptr.vmem [resolvable:$true] %s180_s4 }
  0x2f   : > { %s168_s8 = scalar_lea.sflag [#allocation3], %s167_s12  ;;  %s648_s9 = scalar_lea.hbm %s897_s23, 128 }
  0x30   : > { %p649_p11 = scmp.ne.s32.totalorder %s897_s23, %s648_s9  ;;  %p650_p12 = pneg %p900_p7 }
  0x31   : > { %s653_s29 = scalar_lea.hbm %s1000_s0, 512  ;;  %p654_p2 = scmp.lt.u32.totalorder %s897_s23, %s1000_s0 }
  0x32   : > { %p651_p13 = pnand %p650_p12, %p649_p11  ;;  %p655_p3 = scmp.lt.u32.totalorder %s653_s29, %s648_s9 }
  0x33   : > { %p657_p9 = scmp.lt.u32.totalorder %s648_s9, %s897_s23 }
  0x34   : > { %p652_p0 = pneg %p651_p13  ;;  %p656_p6 = por %p655_p3, %p654_p2 }
  0x36   : > { %p658_p1 = por %p657_p9, %p656_p6 }
  0x38   : > { %p659_p4 = pnand %p658_p1, %p652_p0 }
  0x3a   : > { %662 = shalt.err (!%p659_p4)
}
  0x3b   : > { %s663_s12 = scalar_lea.vmem %s904_s4, 128  ;;  %s770_s22 = smov [#allocation2]  }
  0x3c   : > { %p664_p5 = scmp.ne.s32.totalorder %s904_s4, %s663_s12  ;;  %s668_s26 = sshll.u32 %s770_s22, 4  ;;  %s669_s26 = int_to_ptr.vmem [resolvable:$false] %s668_s26 }
  0x3d   : > { %s670_s6 = scalar_lea.vmem %s669_s26, 256  ;;  %p671_p11 = scmp.lt.s32.totalorder %s904_s4, %s669_s26 }
  0x3e   : > { %p666_p8 = pnand %p664_p5, %p650_p12  ;;  %p672_p13 = scmp.lt.s32.totalorder %s670_s6, %s663_s12 }
  0x40   : > { %p667_p10 = pneg %p666_p8  ;;  %p673_p2 = por %p672_p13, %p671_p11 }
  0x42   : > { %p674_p3 = pnand %p673_p2, %p667_p10 }
  0x44   : > { %677 = shalt.err (!%p674_p3)
}
  0x45   : > { %554 = dma.hbm_to_vmem [thread:$0]  (!%p900_p7), %s897_s23, 128, %s904_s4, %s168_s8  }
  0x46   : > { %s187_s9 = sand.u32 1, %s767_s17   ;;  %s938_s10 = scalar_lea.hbm %s909_s7, 128 }
  0x47   : > { %s191_s11 = scalar_lea.vmem [#allocation4], %s892_s28  ;;  %s188_s30 = scalar_lea.sflag [#allocation5], %s187_s9 }
  0x48   : > { %s201_s29 = sshll.u32 %s191_s11, 4  ;;  %s708_s27 = scalar_lea.hbm %s909_s7, 256  ;;  %s202_s29 = int_to_ptr.vmem [resolvable:$true] %s201_s29 }
  0x49   : > { %p679_p0 = scmp.ne.s32.totalorder %s938_s10, %s708_s27  ;;  %s683_s23 = scalar_lea.hbm %s1001_s1, 512 }
  0x4a   : > { %p684_p1 = scmp.lt.u32.totalorder %s938_s10, %s1001_s1  ;;  %p685_p4 = scmp.lt.u32.totalorder %s683_s23, %s708_s27 }
  0x4b   : > { %p681_p6 = pnand %p679_p0, %p650_p12  ;;  %p687_p8 = scmp.lt.u32.totalorder %s708_s27, %s938_s10 }
  0x4c   : > { %p686_p5 = por %p685_p4, %p684_p1 }
  0x4d   : > { %p682_p9 = pneg %p681_p6 }
  0x4e   : > { %p688_p10 = por %p687_p8, %p686_p5 }
  0x50   : > { %p689_p11 = pnand %p688_p10, %p682_p9 }
  0x52   : > { %692 = shalt.err (!%p689_p11)
}
  0x53   : > { %s693_s28 = scalar_lea.vmem %s202_s29, 128  ;;  %s771_s7 = smov [#allocation4]  }
  0x54   : > { %p694_p13 = scmp.ne.s32.totalorder %s202_s29, %s693_s28  ;;  %s698_s26 = sshll.u32 %s771_s7, 4  ;;  %s699_s26 = int_to_ptr.vmem [resolvable:$false] %s698_s26 }
  0x55   : > { %s700_s6 = scalar_lea.vmem %s699_s26, 256  ;;  %p701_p0 = scmp.lt.s32.totalorder %s202_s29, %s699_s26 }
  0x56   : > { %p696_p2 = pnand %p694_p13, %p650_p12  ;;  %p702_p6 = scmp.lt.s32.totalorder %s700_s6, %s693_s28 }
  0x58   : > { %p697_p3 = pneg %p696_p2  ;;  %p703_p1 = por %p702_p6, %p701_p0 }
  0x5a   : > { %p704_p4 = pnand %p703_p1, %p697_p3 }
  0x5c   : > { %707 = shalt.err (!%p704_p4)
}
  0x5d   : > { %557 = dma.hbm_to_vmem [thread:$0]  (!%p900_p7), %s938_s10, 128, %s202_s29, %s188_s30  }
  0x5e   : > { %p1015_p9 = scmp.ne.s32.totalorder %s1010_s21, 0 }
  0x5f   : > { %s212_s9 = sand.u32 (!%p1015_p9), 1, %s751_s13   ;;  %p1016_p12 = scmp.ne.s32.totalorder (!%p1015_p9), %s1009_s20, 0 }
  0x60   : > { %210 = sbr.rel (%p1015_p9) target bundleno = 600 (0x258), region = 32  ;;  %s514_s11 = sshll.u32 (!%p1015_p9), %s212_s9, 3 }
  0x61   : > { %s213_s27 = scalar_lea.sflag (!%p1015_p9), [#allocation3], %s212_s9  ;;  %s216_s12 = scalar_lea.vmem (!%p1015_p9), [#allocation2], %s514_s11 }
  0x67   : > { %734 = dma.done.wait (%p1016_p12), %s213_s27, 128  }
  0x68   : > { %736 = vsyncadd (%p1016_p12), %s213_s27, 4294967168  ;;  %s221_s5 = sand.u32 1, %s502_s18   ;;  %s225_s10 = scalar_lea.vmem [#allocation4], %s514_s11 }
  0x69   : > { %s222_s22 = scalar_lea.sflag [#allocation5], %s221_s5 }
  0x6a   : > { %738 = dma.done.wait (%p1016_p12), %s222_s22, 128  }
  0x6b   : > { %740 = vsyncadd (%p1016_p12), %s222_s22, 4294967168  ;;  %p1017_p7 = scmp.ne.s32.totalorder %s1008_s19, 0 }
  0x6d   : > { %742 = dma.done.wait (%p1017_p7), [#allocation5], 128  }
  0x6e   : > { %744 = vsyncadd (%p1017_p7), [#allocation5], 4294967168  ;;  %v772_v0 = vmov 0.0|0.0   ;;  %v267_v1 = vld [vmem:[%s216_s12] sm:$0xff]  ;;  %v268_v2 = vld [vmem:[%s225_s10] sm:$0xff]  ;;  %vm773_vm2 = vmmov 0   ;;  %v366_v18 = vlaneseq }
  0x6f   : > { %536 = vmatprep.subr.bf16.mxu0 %v772_v0  ;;  %vm269_vm0 = vcmp.gt.f32.partialorder %v267_v1, 0.0  ;;  %vm270_vm1 = vcmp.gt.f32.partialorder %v268_v2, 0.0  ;;  %v271_v3 = vmul.f32 0.3, %v267_v1  ;;  %v272_v4 = vmul.f32 0.3, %v268_v2 }
  0x70   : > { %v774_v7 = vmov 0.0   ;;  %s775_s18 = smov 124   ;;  %s776_s20 = smov 126   ;;  %vm281_vm3 = vcmask 1031168   ;;  %vm288_vm4 = vcmask 1014784   ;;  %v291_v17 = vld [vmem:[#allocation6] sm:$0xff] }
  0x71   : > { %v273_v5 = vsel %vm269_vm0, %v267_v1, %v271_v3  ;;  %v274_v6 = vsel %vm270_vm1, %v268_v2, %v272_v4  ;;  %533 = vmatprep.mubr.msk.f32.mxu0 %vm773_vm2, %v774_v7  ;;  %vm292_vm5 = vcmask 195584   ;;  %v367_v19 = vand.u32 127, %v366_v18  ;;  %p260_p5 = scmp.lt.s32.totalorder %s759_s15, 1 }
  0x72   : > { %v615_v8 = vpack.i.bf16 %v274_v6, %v273_v5  ;;  %286 = vrot.lane.b32.xlu1 %v274_v6, %s775_s18  ;;  %vm378_vm7 = vcmask 7168   ;;  %vm380_vm8 = vcmask 15360  }
  0x73   : > { %vm371_vm6 = vcmp.lt.s32.totalorder %v367_v19, 16  ;;  %s1026_s15 = smov (!%p260_p5, %s759_s15), 1 }
  0x74   : > { %616 = vrot.lane.b32.xlu0 %v615_v8, %s776_s20  ;;  %s517_s19 = sshll.u32 %s1026_s15, 3 }
  0x75   : > { %s266_s30 = scalar_lea.vmem %s1003_s3, %s517_s19 }
  0x78   : > { %284 = vrot.lane.b32.xlu0 %v273_v5, %s775_s18 }
  0xe4   : > { %v287_v14 = vpop.permute.xlu1 %286 }
  0xe6   : > { %v617_v9 = vpop.permute.xlu0 %616 }
  0xe7   : > { %v619_v10 = vunpack.i.h.bf16 %v617_v9  ;;  %v618_v11 = vunpack.i.l.bf16 %v617_v9 }
  0xe9   : > { %v282_v12 = vsel %vm281_vm3, %v618_v11, %v619_v10 }
  0xea   : > { %v537_v13 = vpack.c.bf16 %v282_v12, %v273_v5  ;;  %v285_v15 = vpop.permute.xlu0 %284 }
  0xeb   : > { %v289_v16 = vsel %vm288_vm4, %v285_v15, %v287_v14 }
  0xec   : > { %538 = vmatpush3.bf16.msra.mxu0 %v537_v13 }
  0xed   : > { %531 = vmatprep.subr.mxu0 %v774_v7 }
  0xf0   : > { %532 = vmatpush3.msra.mxu0 %v289_v16 }
  0xf1   : > { %534 = vmatmul.mubr.msk.f32.vlgmr.msra.gmra.mrb[0].mxu0 %vm292_vm5, %v291_v17 }
 0x1c4   : > { %v362_v20 = vpop.f32.mrb[0].mxu0 }
 0x1c5   : > { %v535_v21 = vpop.f32.mrb[1].mxu0  ;;  %v372_v22 = vsel %vm371_vm6, %v362_v20, 0.0 }
 0x1c6   : > { %373 = vadd.xlane.f32.xlu1 %v372_v22  ;;  %v375_v23 = vmul.f32 %v372_v22, %v372_v22 }
 0x1c8   : > { %376 = vadd.xlane.f32.xlu0 %v375_v23 }
 0x253   : > { %v374_v24 = vpop.xlane.xlu1 %373 }
 0x255   : > { %v377_v25 = vpop.xlane.xlu0 %376 }
 0x256   : > { %v379_v26 = vsel %vm378_vm7, %v374_v24, %v377_v25 }
 0x257   : > { %381 = vst.msk [vmem:[%s266_s30] sm:$0xff] %vm380_vm8, %v379_v26 }
 0x258 PF: > { %s19_s17 = sadd.s32 1, %s767_s17   ;;  %s1018_s12 = smov %s751_s13 }
 0x259   : > { %p16_p8 = scmp.ge.s32.totalorder %s19_s17, 4   ;;  %s1019_s13 = smov %s755_s14 }
 0x25a   : > { %s1020_s14 = smov %s890_s24  ;;  %s1021_s15 = smov %s763_s16 }
 0x25b   : > { %s1022_s16 = smov %s1024_s25  ;;  %18 = sbr.rel (!%p16_p8) target bundleno = 6 (0x6), region = 89 }
 0x262   :  { %407 = vsyncpa [#allocation3], 1 }
 0x263   :  { %409 = vsyncpa [#allocation3 + $0x1], 1 }
 0x264   :  { %410 = vsyncpa [#allocation5], 1 }
 0x265   :  { %412 = vsyncpa [#allocation5 + $0x1], 1 }

</bundles_post_ra>
